<compile_context>
chip_gen: v5e
topology: v5e:2x2
jax: 0.10.0
libtpu: 0.0.40
codegen_flags: <defaults>
</compile_context>

<pallas_src>
import functools

import jax
import jax.numpy as jnp
from jax.experimental import pallas as pl
from jax.experimental.pallas import tpu as pltpu

BN_EPS = 1e-5
LRELU_SLOPE = 0.01
LANE = 128
SUBLANE = 8


def _round_up(x, m):
  return (x + m - 1) // m * m


def _fused_dnn_kernel(*refs, n_hidden):
  """refs = (x_ref, w0, b0, w1, b1, ..., w_pred, b_pred, o_ref).

  BN math is pre-folded into (w, b).  Hidden layer: y = LeakyReLU(x @ w + b);
  final layer: x @ w + b.  Weights are bf16, biases/activations f32; all
  activations stay in VMEM/vregs between layers (single fused kernel).
  """
  x_ref = refs[0]
  o_ref = refs[-1]
  wb = refs[1:-1]

  h = x_ref[...]                                        # f32 (tb, in_dim)
  for i in range(n_hidden):
    w = wb[2 * i][...]                                  # bf16 (K, N)
    b = wb[2 * i + 1][...]                              # f32  (1, N)
    h = jnp.dot(h.astype(jnp.bfloat16), w,
                preferred_element_type=jnp.float32) + b
    h = jnp.maximum(h, LRELU_SLOPE * h)                 # LeakyReLU
  # dropout: identity in eval mode
  wp = wb[2 * n_hidden][...]
  bp = wb[2 * n_hidden + 1][...]
  y = jnp.dot(h.astype(jnp.bfloat16), wp,
              preferred_element_type=jnp.float32) + bp
  o_ref[...] = y.astype(o_ref.dtype)


def init_dnn_params(key, in_dim, hid_dim, layers, num_classes=1):
  """Deterministic init mirroring the module's __init__ shapes.

  PyTorch Linear weight is (out, in); we store the transposed (in, out) copy.
  BatchNorm1d: gamma=1, beta=0, running_mean=0, running_var=1.
  """
  if not isinstance(hid_dim, list):
    hid_dim = [hid_dim] * layers
  dims = [in_dim] + hid_dim
  params = {"layers": [], "pred": None}
  for i in range(layers):
    fan_in, fan_out = dims[i], dims[i + 1]
    key, kw, kb = jax.random.split(key, 3)
    bound = 1.0 / jnp.sqrt(fan_in)
    w = jax.random.uniform(kw, (fan_out, fan_in), jnp.float32, -bound, bound)
    b = jax.random.uniform(kb, (fan_out,), jnp.float32, -bound, bound)
    params["layers"].append(dict(
        w_t=w.T,                                   # (in, out)
        b=b,
        gamma=jnp.ones((fan_out,), jnp.float32),
        beta=jnp.zeros((fan_out,), jnp.float32),
        mean=jnp.zeros((fan_out,), jnp.float32),
        var=jnp.ones((fan_out,), jnp.float32),
    ))
  fan_in = dims[-1]
  key, kw, kb = jax.random.split(key, 3)
  bound = 1.0 / jnp.sqrt(fan_in)
  wp = jax.random.uniform(kw, (num_classes, fan_in), jnp.float32, -bound, bound)
  bp = jax.random.uniform(kb, (num_classes,), jnp.float32, -bound, bound)
  params["pred"] = dict(w_t=wp.T, b=bp)
  params["in_dim"] = int(in_dim)     # static Python int, never traced
  return params


def make_dnn_forward(params, tile_b=512):
  """Folds BN (eval) into each Linear as bf16 weights; returns a jitted fn."""
  in_dim = int(params["in_dim"])
  layers = params["layers"]
  n_hidden = len(layers)

  # ---- Fold BatchNorm (eval, running stats) into each Linear ----
  # w_eff = w * (gamma*rsqrt(var+eps));  b_eff = (b-mean)*scale + beta.
  folded = []
  for lp in layers:
    w_t = lp["w_t"].astype(jnp.float32)                 # (in, out)
    scale = lp["gamma"] * jax.lax.rsqrt(lp["var"] + BN_EPS)
    w_eff = (w_t * scale[None, :]).astype(jnp.bfloat16)
    b_eff = ((lp["b"] - lp["mean"]) * scale + lp["beta"]).reshape(1, -1)
    folded.append((w_eff, b_eff.astype(jnp.float32)))
  wp = params["pred"]["w_t"].astype(jnp.bfloat16)        # (hid, n_cls)
  bp = params["pred"]["b"].reshape(1, -1).astype(jnp.float32)
  folded.append((wp, bp))
  n_cls = int(wp.shape[1])

  flat_wb = [a for pair in folded for a in pair]
  kernel = functools.partial(_fused_dnn_kernel, n_hidden=n_hidden)

  # Resident footprint (single-buffered bf16 weights + f32 biases).
  weight_bytes = sum(int(w.size) * 2 + int(b.size) * 4 for w, b in folded)
  max_width = max([in_dim, n_cls] + [int(w.shape[1]) for w, _ in folded])

  def _choose_batch_tile(B):
    # Block's 2nd-to-last dim must be a multiple of 8 OR equal the full dim.
    if B <= 2 * SUBLANE:
      return B, B                          # single full-array block, no pad
    if B <= tile_b:
      tb = _round_up((B + 1) // 2, SUBLANE)   # >=2 blocks (v7x megacore)
      return tb, _round_up(B, tb)
    return tile_b, _round_up(B, tile_b)

  @jax.jit
  def forward(x):
    if x.ndim != 2:
      x = x.reshape(-1, in_dim)                          # in_dim: Python int
    x = x.astype(jnp.float32)
    B = x.shape[0]                                       # static under jit

    tb, b_pad = _choose_batch_tile(B)
    if b_pad != B:                                       # batch-only padding
      x = jnp.pad(x, ((0, b_pad - B), (0, 0)))

    grid = (b_pad // tb,)
    in_specs = [pl.BlockSpec((tb, in_dim), lambda i: (i, 0))]
    for w, b in folded:
      # Constant index_map -> block never changes; no need to double-buffer.
      in_specs.append(pl.BlockSpec(w.shape, lambda i: (0, 0),
                                   pipeline_mode=pl.Buffered(1)))
      in_specs.append(pl.BlockSpec(b.shape, lambda i: (0, 0),
                                   pipeline_mode=pl.Buffered(1)))
    out_specs = pl.BlockSpec((tb, n_cls), lambda i: (i, 0))

    # Real (unpadded, bf16-weight) cost for XLA's scheduler.
    flops = 2 * b_pad * sum(int(w.shape[0]) * int(w.shape[1])
                            for w, _ in folded)
    bytes_accessed = (4 * b_pad * (in_dim + n_cls)
                      + sum(2 * int(w.size) + 4 * int(b.size)
                            for w, b in folded))

    # VMEM budget: double-buffered x/out tiles + single-buffered weights +
    # a few live f32 activation slabs (rounded to lane tiles), 2x headroom,
    # clamped to [32 MiB, 64 MiB] so it is valid on every TPU generation.
    io_bytes = 2 * 4 * tb * (_round_up(in_dim, LANE) + _round_up(n_cls, LANE))
    act_bytes = 4 * 4 * tb * _round_up(max_width, LANE)
    vmem_limit = min(64 << 20,
                     max(32 << 20, 2 * (weight_bytes + io_bytes + act_bytes)))

    y = pl.pallas_call(
        kernel,
        out_shape=jax.ShapeDtypeStruct((b_pad, n_cls), jnp.float32),
        grid=grid,
        in_specs=in_specs,
        out_specs=out_specs,
        compiler_params=pltpu.CompilerParams(
            dimension_semantics=("parallel",),
            vmem_limit_bytes=int(vmem_limit)),
        cost_estimate=pl.CostEstimate(
            flops=flops, transcendentals=0, bytes_accessed=bytes_accessed),
    )(x, *flat_wb)
    return y if b_pad == B else y[:B]

  return forward


def _reference_forward(params, x):
  """Pure-JAX f32 reference of the PyTorch eval-mode forward."""
  in_dim = params["in_dim"]
  if x.ndim != 2:
    x = x.reshape(-1, in_dim)
  for lp in params["layers"]:
    y = x @ lp["w_t"] + lp["b"]
    y = (y - lp["mean"]) * jax.lax.rsqrt(lp["var"] + BN_EPS) * lp["gamma"] + lp["beta"]
    x = jnp.where(y > 0, y, LRELU_SLOPE * y)
  return x @ params["pred"]["w_t"] + params["pred"]["b"]


if __name__ == "__main__":
  key = jax.random.PRNGKey(0)
  kx, kp = jax.random.split(key)

  in_dim, hid_dim, n_layers, num_classes = 16, 32, 3, 1
  params = init_dnn_params(kp, in_dim, hid_dim, n_layers, num_classes)

  # Non-2D input exercises the `x.reshape(-1, inDim)` path: (2, 4, 16) -> (8, 16).
  x = jax.random.normal(kx, (2, 4, in_dim), dtype=jnp.float32)

  forward = make_dnn_forward(params)
  out = jax.block_until_ready(forward(x))

  ref = _reference_forward(params, x)
  assert out.shape == (8, num_classes), out.shape
  # Weights run through the MXU in bf16 -> compare to the f32 reference with
  # bf16-level tolerance.
  assert jnp.allclose(out, ref, atol=2e-2, rtol=2e-2), "mismatch vs JAX reference"

  print("KERNEL_OK")
</pallas_src>

<mosaic_0001>
module attributes {stable_mosaic.version = 11 : i64} {
  func.func @_fused_dnn_kernel(%arg0: i32, %arg1: memref<8x16xf32, #tpu.memory_space<vmem>>, %arg2: memref<16x32xbf16, #tpu.memory_space<vmem>>, %arg3: memref<1x32xf32, #tpu.memory_space<vmem>>, %arg4: memref<32x32xbf16, #tpu.memory_space<vmem>>, %arg5: memref<1x32xf32, #tpu.memory_space<vmem>>, %arg6: memref<32x32xbf16, #tpu.memory_space<vmem>>, %arg7: memref<1x32xf32, #tpu.memory_space<vmem>>, %arg8: memref<32x1xbf16, #tpu.memory_space<vmem>>, %arg9: memref<1x1xf32, #tpu.memory_space<vmem>>, %arg10: memref<8x1xf32, #tpu.memory_space<vmem>>) attributes {dimension_semantics = [#tpu.dimension_semantics<parallel>], iteration_bounds = array<i64: 1>, scalar_prefetch = 0 : i64, scratch_operands = 0 : i64, tpu.core_type = #tpu.core_type<tc>, window_params = [{transform_indices = @transform_0, window_bounds = array<i64: 8, 16>}, {pipeline_mode = #tpu.pipeline_mode<synchronous>, transform_indices = @transform_1, window_bounds = array<i64: 16, 32>}, {pipeline_mode = #tpu.pipeline_mode<synchronous>, transform_indices = @transform_2, window_bounds = array<i64: 1, 32>}, {pipeline_mode = #tpu.pipeline_mode<synchronous>, transform_indices = @transform_3, window_bounds = array<i64: 32, 32>}, {pipeline_mode = #tpu.pipeline_mode<synchronous>, transform_indices = @transform_4, window_bounds = array<i64: 1, 32>}, {pipeline_mode = #tpu.pipeline_mode<synchronous>, transform_indices = @transform_5, window_bounds = array<i64: 32, 32>}, {pipeline_mode = #tpu.pipeline_mode<synchronous>, transform_indices = @transform_6, window_bounds = array<i64: 1, 32>}, {pipeline_mode = #tpu.pipeline_mode<synchronous>, transform_indices = @transform_7, window_bounds = array<i64: 32, 1>}, {pipeline_mode = #tpu.pipeline_mode<synchronous>, transform_indices = @transform_8, window_bounds = array<i64: 1, 1>}, {transform_indices = @transform_9, window_bounds = array<i64: 8, 1>}]} {
    %c0 = arith.constant 0 : index
    %c0_0 = arith.constant 0 : index
    %0 = vector.load %arg1[%c0, %c0_0] : memref<8x16xf32, #tpu.memory_space<vmem>>, vector<8x16xf32>
    %c0_1 = arith.constant 0 : index
    %c0_2 = arith.constant 0 : index
    %1 = vector.load %arg2[%c0_1, %c0_2] : memref<16x32xbf16, #tpu.memory_space<vmem>>, vector<16x32xbf16>
    %c0_3 = arith.constant 0 : index
    %c0_4 = arith.constant 0 : index
    %2 = vector.load %arg3[%c0_3, %c0_4] : memref<1x32xf32, #tpu.memory_space<vmem>>, vector<1x32xf32>
    %3 = arith.truncf %0 : vector<8x16xf32> to vector<8x16xbf16>
    %cst = arith.constant dense<0.000000e+00> : vector<8x32xf32>
    %4 = tpu.matmul %3, %1, %cst {dimension_numbers = #tpu.dot_dimension_numbers<[1], [0], [0], [1], [0, 0, 1, 1], [], []>} : vector<8x16xbf16>, vector<16x32xbf16>, vector<8x32xf32> -> vector<8x32xf32>
    %5 = vector.broadcast %2 : vector<1x32xf32> to vector<8x32xf32>
    %6 = arith.addf %4, %5 : vector<8x32xf32>
    %cst_5 = arith.constant 0.00999999977 : f32
    %7 = vector.broadcast %cst_5 : f32 to vector<8x32xf32>
    %8 = arith.mulf %7, %6 : vector<8x32xf32>
    %9 = arith.maximumf %6, %8 : vector<8x32xf32>
    %c0_6 = arith.constant 0 : index
    %c0_7 = arith.constant 0 : index
    %10 = vector.load %arg4[%c0_6, %c0_7] : memref<32x32xbf16, #tpu.memory_space<vmem>>, vector<32x32xbf16>
    %c0_8 = arith.constant 0 : index
    %c0_9 = arith.constant 0 : index
    %11 = vector.load %arg5[%c0_8, %c0_9] : memref<1x32xf32, #tpu.memory_space<vmem>>, vector<1x32xf32>
    %12 = arith.truncf %9 : vector<8x32xf32> to vector<8x32xbf16>
    %cst_10 = arith.constant dense<0.000000e+00> : vector<8x32xf32>
    %13 = tpu.matmul %12, %10, %cst_10 {dimension_numbers = #tpu.dot_dimension_numbers<[1], [0], [0], [1], [0, 0, 1, 1], [], []>} : vector<8x32xbf16>, vector<32x32xbf16>, vector<8x32xf32> -> vector<8x32xf32>
    %14 = vector.broadcast %11 : vector<1x32xf32> to vector<8x32xf32>
    %15 = arith.addf %13, %14 : vector<8x32xf32>
    %cst_11 = arith.constant 0.00999999977 : f32
    %16 = vector.broadcast %cst_11 : f32 to vector<8x32xf32>
    %17 = arith.mulf %16, %15 : vector<8x32xf32>
    %18 = arith.maximumf %15, %17 : vector<8x32xf32>
    %c0_12 = arith.constant 0 : index
    %c0_13 = arith.constant 0 : index
    %19 = vector.load %arg6[%c0_12, %c0_13] : memref<32x32xbf16, #tpu.memory_space<vmem>>, vector<32x32xbf16>
    %c0_14 = arith.constant 0 : index
    %c0_15 = arith.constant 0 : index
    %20 = vector.load %arg7[%c0_14, %c0_15] : memref<1x32xf32, #tpu.memory_space<vmem>>, vector<1x32xf32>
    %21 = arith.truncf %18 : vector<8x32xf32> to vector<8x32xbf16>
    %cst_16 = arith.constant dense<0.000000e+00> : vector<8x32xf32>
    %22 = tpu.matmul %21, %19, %cst_16 {dimension_numbers = #tpu.dot_dimension_numbers<[1], [0], [0], [1], [0, 0, 1, 1], [], []>} : vector<8x32xbf16>, vector<32x32xbf16>, vector<8x32xf32> -> vector<8x32xf32>
    %23 = vector.broadcast %20 : vector<1x32xf32> to vector<8x32xf32>
    %24 = arith.addf %22, %23 : vector<8x32xf32>
    %cst_17 = arith.constant 0.00999999977 : f32
    %25 = vector.broadcast %cst_17 : f32 to vector<8x32xf32>
    %26 = arith.mulf %25, %24 : vector<8x32xf32>
    %27 = arith.maximumf %24, %26 : vector<8x32xf32>
    %c0_18 = arith.constant 0 : index
    %c0_19 = arith.constant 0 : index
    %28 = vector.load %arg8[%c0_18, %c0_19] : memref<32x1xbf16, #tpu.memory_space<vmem>>, vector<32x1xbf16>
    %c0_20 = arith.constant 0 : index
    %c0_21 = arith.constant 0 : index
    %29 = vector.load %arg9[%c0_20, %c0_21] : memref<1x1xf32, #tpu.memory_space<vmem>>, vector<1x1xf32>
    %30 = arith.truncf %27 : vector<8x32xf32> to vector<8x32xbf16>
    %cst_22 = arith.constant dense<0.000000e+00> : vector<8x1xf32>
    %31 = tpu.matmul %30, %28, %cst_22 {dimension_numbers = #tpu.dot_dimension_numbers<[1], [0], [0], [1], [0, 0, 1, 1], [], []>} : vector<8x32xbf16>, vector<32x1xbf16>, vector<8x1xf32> -> vector<8x1xf32>
    %32 = vector.broadcast %29 : vector<1x1xf32> to vector<8x1xf32>
    %33 = arith.addf %31, %32 : vector<8x1xf32>
    %c0_23 = arith.constant 0 : index
    %c0_24 = arith.constant 0 : index
    %34 = vector.load %arg10[%c0_23, %c0_24] : memref<8x1xf32, #tpu.memory_space<vmem>>, vector<8x1xf32>
    tpu.vector_store %arg10[%c0_23, %c0_24], %33 {strides = array<i32>} : memref<8x1xf32, #tpu.memory_space<vmem>>, vector<8x1xf32>,
    return
  }
  func.func @transform_0(%arg0: i32) -> (i32, i32) {
    %c0_i32 = arith.constant 0 : i32
    %c0_i32_0 = arith.constant 0 : i32
    return %arg0, %c0_i32 : i32, i32
  }
  func.func @transform_1(%arg0: i32) -> (i32, i32) {
    %c0_i32 = arith.constant 0 : i32
    %c0_i32_0 = arith.constant 0 : i32
    %c0_i32_1 = arith.constant 0 : i32
    return %c0_i32, %c0_i32_0 : i32, i32
  }
  func.func @transform_2(%arg0: i32) -> (i32, i32) {
    %c0_i32 = arith.constant 0 : i32
    %c0_i32_0 = arith.constant 0 : i32
    %c0_i32_1 = arith.constant 0 : i32
    return %c0_i32, %c0_i32_0 : i32, i32
  }
  func.func @transform_3(%arg0: i32) -> (i32, i32) {
    %c0_i32 = arith.constant 0 : i32
    %c0_i32_0 = arith.constant 0 : i32
    %c0_i32_1 = arith.constant 0 : i32
    return %c0_i32, %c0_i32_0 : i32, i32
  }
  func.func @transform_4(%arg0: i32) -> (i32, i32) {
    %c0_i32 = arith.constant 0 : i32
    %c0_i32_0 = arith.constant 0 : i32
    %c0_i32_1 = arith.constant 0 : i32
    return %c0_i32, %c0_i32_0 : i32, i32
  }
  func.func @transform_5(%arg0: i32) -> (i32, i32) {
    %c0_i32 = arith.constant 0 : i32
    %c0_i32_0 = arith.constant 0 : i32
    %c0_i32_1 = arith.constant 0 : i32
    return %c0_i32, %c0_i32_0 : i32, i32
  }
  func.func @transform_6(%arg0: i32) -> (i32, i32) {
    %c0_i32 = arith.constant 0 : i32
    %c0_i32_0 = arith.constant 0 : i32
    %c0_i32_1 = arith.constant 0 : i32
    return %c0_i32, %c0_i32_0 : i32, i32
  }
  func.func @transform_7(%arg0: i32) -> (i32, i32) {
    %c0_i32 = arith.constant 0 : i32
    %c0_i32_0 = arith.constant 0 : i32
    %c0_i32_1 = arith.constant 0 : i32
    return %c0_i32, %c0_i32_0 : i32, i32
  }
  func.func @transform_8(%arg0: i32) -> (i32, i32) {
    %c0_i32 = arith.constant 0 : i32
    %c0_i32_0 = arith.constant 0 : i32
    %c0_i32_1 = arith.constant 0 : i32
    return %c0_i32, %c0_i32_0 : i32, i32
  }
  func.func @transform_9(%arg0: i32) -> (i32, i32) {
    %c0_i32 = arith.constant 0 : i32
    %c0_i32_0 = arith.constant 0 : i32
    return %arg0, %c0_i32 : i32, i32
  }
}

</mosaic_0001>

<bundles_post_ra>
// kernel: forward.1
= control target key start
LH: loop header
LB: loop body
LE: loop exit
PB: predicated region body
PF: predicated region fallthrough
CT: control target
= control target key end

     0   :  { %s590_s0 = inlined_call_operand.hbm [shape: f32[8,16], index: 0, kind: input, shape index: {}]   ;;  %s591_s1 = inlined_call_operand.hbm [shape: bf16[16,32], index: 1, kind: input, shape index: {}]   ;;  %s592_s2 = inlined_call_operand.hbm [shape: f32[1,32], index: 2, kind: input, shape index: {}]   ;;  %s593_s3 = inlined_call_operand.hbm [shape: bf16[32,32], index: 3, kind: input, shape index: {}]   ;;  %s594_s4 = inlined_call_operand.vmem [shape: f32[1,32], index: 4, kind: input, shape index: {}]   ;;  %s595_s5 = inlined_call_operand.hbm [shape: bf16[32,32], index: 5, kind: input, shape index: {}]   ;;  %s596_s6 = inlined_call_operand.vmem [shape: f32[1,32], index: 6, kind: input, shape index: {}]   ;;  %s597_s7 = inlined_call_operand.hbm [shape: bf16[32,1], index: 7, kind: input, shape index: {}]   ;;  %s598_s8 = inlined_call_operand.<no memory space> [shape: f32[1,1], index: 8, kind: input, shape index: {}]   ;;  %s599_s9 = inlined_call_operand.vmem [shape: f32[8,1], index: 9, kind: output, shape index: {}]  }
   0x1   :  { %v14_v0 = vstv %s598_s8 }
   0x2   :  { %15 = vst [vmem:[#allocation2] sm:$0x1] %v14_v0 }
   0x3   :  { %16 = vsyncpa [#allocation4], 0 }
   0x4   :  { %17 = vsyncpa [#allocation6], 0 }
   0x5   :  { %18 = vsyncpa [#allocation9], 0  ;;  %s35_s13 = sshll.u32 %s591_s1, 4  ;;  %s36_s13 = int_to_ptr.hbm [resolvable:$true] %s35_s13 }
   0x6   :  { %19 = vsyncpa [#allocation12], 0  ;;  %s487_s14 = smov [#allocation5]   ;;  %s59_s18 = sshll.u32 %s593_s3, 4  ;;  %s60_s18 = int_to_ptr.hbm [resolvable:$true] %s59_s18 }
   0x7   :  { %s37_s15 = sshll.u32 %s487_s14, 4  ;;  %s488_s19 = smov 64   ;;  %s38_s15 = int_to_ptr.vmem [resolvable:$true] %s37_s15 }
   0x8   :  { %s489_s20 = smov 4   ;;  %s490_s8 = smov [#allocation8]  }
   0x9   :  { %43 = dma.hbm_to_vmem [thread:$0]  %s36_s13, 128, %s38_s15, [#allocation6], %s488_s19, %s488_s19, %s489_s20  }
   0xa   :  { %s61_s21 = sshll.u32 %s490_s8, 4  ;;  %s25_s23 = sshll.u32 %s590_s0, 4  ;;  %s62_s21 = int_to_ptr.vmem [resolvable:$true] %s61_s21  ;;  %s26_s23 = int_to_ptr.hbm [resolvable:$true] %s25_s23 }
   0xb   :  { %67 = dma.hbm_to_vmem [thread:$0]  %s60_s18, 256, %s62_s21, [#allocation9], %s488_s19, %s488_s19, %s489_s20  }
   0xc   :  { %s49_s25 = sshll.u32 %s592_s2, 4  ;;  %s491_s26 = smov [#allocation3]   ;;  %s50_s25 = int_to_ptr.hbm [resolvable:$true] %s49_s25 }
   0xd   :  { %s27_s27 = sshll.u32 %s491_s26, 4  ;;  %s492_s28 = smov [#allocation7]   ;;  %s28_s27 = int_to_ptr.vmem [resolvable:$true] %s27_s27 }
   0xe   :  { %30 = dma.hbm_to_vmem [thread:$0]  %s26_s23, 128, %s28_s27, [#allocation4]  }
   0xf   :  { %s51_s29 = sshll.u32 %s492_s28, 4  ;;  %s74_s0 = sshll.u32 %s595_s5, 4  ;;  %s52_s29 = int_to_ptr.vmem [resolvable:$true] %s51_s29  ;;  %s75_s0 = int_to_ptr.hbm [resolvable:$true] %s74_s0 }
  0x10   :  { %54 = dma.hbm_to_vmem [thread:$0]  %s50_s25, 16, %s52_s29, [#allocation6]  }
  0x11   :  { %s89_s13 = sshll.u32 %s597_s7, 4  ;;  %s493_s14 = smov [#allocation10]   ;;  %s90_s13 = int_to_ptr.hbm [resolvable:$true] %s89_s13 }
  0x12   :  { %s76_s2 = sshll.u32 %s493_s14, 4  ;;  %s494_s15 = smov [#allocation11]   ;;  %s77_s2 = int_to_ptr.vmem [resolvable:$true] %s76_s2 }
  0x13   :  { %82 = dma.hbm_to_vmem [thread:$0]  %s75_s0, 256, %s77_s2, [#allocation9], %s488_s19, %s488_s19, %s489_s20  }
  0x14   :  { %s91_s16 = sshll.u32 %s494_s15, 4  ;;  %s92_s16 = int_to_ptr.vmem [resolvable:$true] %s91_s16 }
  0x15   :  { %97 = dma.hbm_to_vmem [thread:$0]  %s90_s13, 256, %s92_s16, [#allocation12], %s488_s19, %s488_s19, %s489_s20  }
  0x16   :  { %479 = dma.done.wait [#allocation4], 128  }
  0x17   :  { %480 = vsyncadd [#allocation4], 4294967168 }
  0x18   :  { %481 = dma.done.wait [#allocation6], 144  }
  0x19   :  { %482 = vsyncadd [#allocation6], 4294967152 }
  0x1a   :  { %483 = dma.done.wait [#allocation9], 512  }
  0x1b   :  { %484 = vsyncadd [#allocation9], 4294966784 }
  0x1c   :  { %485 = dma.done.wait [#allocation12], 256  }
  0x1d   :  { %486 = vsyncadd [#allocation12], 4294967040  ;;  %v316_v1 = vld [vmem:[#allocation5] sm:$0xff]  ;;  %v125_v2 = vld [vmem:[#allocation3] sm:$0xff]  ;;  %vm139_vm0 = vcmask 130048   ;;  %vm179_vm1 = vcmask 261120  }
  0x1e   :  { %v129_v3 = vpack.c.bf16 %v125_v2, %v125_v2  ;;  %150 = vmatpush.bf16.msra.mxu0 %v316_v1  ;;  %v318_v4 = vld [vmem:[#allocation8 + $0x8] sm:$0xff]  ;;  %v317_v5 = vld [vmem:[#allocation8] sm:$0xff]  ;;  %v331_v6 = vld [vmem:[#allocation7] ss:$0 sm:$0xff]  ;;  %vm274_vm2 = vcmask 7168  }
  0x1f   :  { %189 = vmatpush.bf16.msra.mxu1 %v318_v4  ;;  %v320_v13 = vld [vmem:[#allocation10 + $0x8] sm:$0xff]  ;;  %v319_v14 = vld [vmem:[#allocation10] sm:$0xff]  ;;  %v332_v15 = vld [vmem:[%s594_s4] ss:$0 sm:$0xff] }
  0x20   :  { %228 = vmatpush.bf16.msra.mxu2 %v320_v13  ;;  %v322_v22 = vld [vmem:[#allocation11 + $0x8] sm:$0xff]  ;;  %v321_v23 = vld [vmem:[#allocation11] sm:$0xff] }
  0x21   :  { %288 = vmatmul.msk.bf16.vlgmr.msra.gmra.mxu0 %vm139_vm0, %v129_v3  ;;  %267 = vmatpush.bf16.msra.mxu3 %v322_v22  ;;  %v333_v24 = vld [vmem:[%s596_s6] ss:$0 sm:$0xff] }
  0x22   :  { %v334_v31 = vld [vmem:[#allocation2] ss:$0 sm:$0xff] }
  0x23   :  { %190 = vmatpush.bf16.msra.mxu1 %v317_v5 }
  0x24   :  { %229 = vmatpush.bf16.msra.mxu2 %v319_v14 }
  0x25   :  { %268 = vmatpush.bf16.msra.mxu3 %v321_v23 }
  0x9e   :  { %v152_v7 = vpop.f32.mrf.mxu0 }
  0x9f   :  { %v153_v8 = vadd.f32 %v331_v6, %v152_v7 }
  0xa1   :  { %v156_v9 = vmul.f32 0.01, %v153_v8 }
  0xa3   :  { %v157_v10 = vmax.f32 %v153_v8, %v156_v9 }
  0xa5   :  { %v163_v11 = vpack.c.bf16 %v157_v10, %v157_v10 }
  0xa6   :  { %v154_v12 = vpop.f32.mrf.mxu0 }
  0xa7   :  { %297 = vmatmul.msk.bf16.vlgmr.msra.gmra.mxu1 %vm179_vm1, %v163_v11 }
 0x124   :  { %v192_v16 = vpop.f32.mrf.mxu1 }
 0x125   :  { %v193_v17 = vadd.f32 %v332_v15, %v192_v16 }
 0x127   :  { %v196_v18 = vmul.f32 0.01, %v193_v17 }
 0x129   :  { %v197_v19 = vmax.f32 %v193_v17, %v196_v18 }
 0x12b   :  { %v203_v20 = vpack.c.bf16 %v197_v19, %v197_v19 }
 0x12c   :  { %v194_v21 = vpop.f32.mrf.mxu1 }
 0x12d   :  { %306 = vmatmul.msk.bf16.vlgmr.msra.gmra.mxu2 %vm179_vm1, %v203_v20 }
 0x1b0   :  { %v231_v25 = vpop.f32.mrf.mxu2 }
 0x1b1   :  { %v232_v26 = vadd.f32 %v333_v24, %v231_v25 }
 0x1b3   :  { %v235_v27 = vmul.f32 0.01, %v232_v26 }
 0x1b5   :  { %v236_v28 = vmax.f32 %v232_v26, %v235_v27 }
 0x1b7   :  { %v242_v29 = vpack.c.bf16 %v236_v28, %v236_v28 }
 0x1b8   :  { %v233_v30 = vpop.f32.mrf.mxu2 }
 0x1b9   :  { %315 = vmatmul.msk.bf16.vlgmr.msra.gmra.mxu3 %vm179_vm1, %v242_v29 }
 0x23c   :  { %v270_v32 = vpop.f32.mrf.mxu3 }
 0x23d   :  { %v271_v33 = vadd.f32 %v334_v31, %v270_v32 }
 0x23f   :  { %275 = vst.msk [vmem:[%s599_s9] sm:$0xff] %vm274_vm2, %v271_v33 }
 0x244   :  { %v272_v34 = vpop.f32.mrf.mxu3 }
 0x245   :  { %280 = vsyncpa [#allocation4], 1 }
 0x246   :  { %281 = vsyncpa [#allocation6], 1 }
 0x247   :  { %282 = vsyncpa [#allocation9], 1 }
 0x248   :  { %283 = vsyncpa [#allocation12], 1 }

</bundles_post_ra>
